<compile_context>
chip_gen: v7x
topology: tpu7x:2x2x1
jax: 0.10.0
libtpu: 0.0.40
codegen_flags: <defaults>
</compile_context>

<pallas_src>
import functools
import math

import jax
import jax.numpy as jnp
from jax.experimental import pallas as pl
from jax.experimental.pallas import tpu as pltpu  # noqa: F401  (kept for TPU-specific tuning hooks)


# ---------------------------------------------------------------------------
# In-kernel helpers
# ---------------------------------------------------------------------------
def _erf(x):
    # Abramowitz & Stegun 7.1.26 polynomial (max abs err ~1.5e-7) — exact-GELU
    # surrogate that lowers cleanly on Mosaic (only exp/mul/add/where).
    a1, a2, a3, a4, a5 = 0.254829592, -0.284496736, 1.421413741, -1.453152027, 1.061405429
    p = 0.3275911
    sgn = jnp.where(x >= 0.0, 1.0, -1.0)
    ax = jnp.abs(x)
    t = 1.0 / (1.0 + p * ax)
    poly = ((((a5 * t + a4) * t + a3) * t + a2) * t + a1) * t
    return sgn * (1.0 - poly * jnp.exp(-ax * ax))


def _gelu_exact(x):
    # nn.GELU() default (approximate='none'): 0.5*x*(1+erf(x/sqrt(2)))
    return 0.5 * x * (1.0 + _erf(x * 0.7071067811865476))


# ---------------------------------------------------------------------------
# Pallas kernel: single invocation, everything resident in VMEM.
#   c_ref : (B*Sc, H) content tokens (batch-major flattened)
#   s_ref : (B*Ss, H) style tokens
#   o_ref : (B*Sc, H) output
# ---------------------------------------------------------------------------
def decoder_kernel(c_ref, s_ref, g_ref, be_ref,
                   wq_ref, bq_ref, wkv_ref, bkv_ref,
                   wo_ref, bo_ref, w1_ref, b1_ref, w2_ref, b2_ref,
                   o_ref, *, B, Sc, Ss, H, inv_scale):
    eps = 1e-5
    gamma = g_ref[...]   # (1, H)
    beta = be_ref[...]   # (1, H)

    def layer_norm(x):
        mu = jnp.mean(x, axis=-1, keepdims=True)
        var = jnp.mean(jnp.square(x - mu), axis=-1, keepdims=True)
        return (x - mu) * jax.lax.rsqrt(var + eps) * gamma + beta

    c = c_ref[...]   # (B*Sc, H)
    s = s_ref[...]   # (B*Ss, H)

    # layer_nrm(content), fc_q — one matmul over all batches' rows.
    z = layer_norm(c)
    q = jnp.dot(z, wq_ref[...], preferred_element_type=jnp.float32) + bq_ref[...]

    # layer_nrm(style), fused fc_kv: single (H, 2H) matmul, lane-slice k / v.
    zs = layer_norm(s)
    kv = jnp.dot(zs, wkv_ref[...], preferred_element_type=jnp.float32) + bkv_ref[...]
    k = kv[:, :H]
    v = kv[:, H:]

    # Scaled dot-product attention, per batch (static unrolled loop, B is tiny).
    att_rows = []
    for b in range(B):
        qb = q[b * Sc:(b + 1) * Sc, :]   # (Sc, H) — sublane-aligned static slice
        kb = k[b * Ss:(b + 1) * Ss, :]   # (Ss, H)
        vb = v[b * Ss:(b + 1) * Ss, :]   # (Ss, H)
        # Contract the last dim of both operands (q . k^T) without an explicit
        # transpose / relayout.
        scores = jax.lax.dot_general(
            qb, kb, (((1,), (1,)), ((), ())),
            preferred_element_type=jnp.float32) * inv_scale
        m = jnp.max(scores, axis=-1, keepdims=True)
        e = jnp.exp(scores - m)
        denom = jnp.sum(e, axis=-1, keepdims=True)
        w = e * pl.reciprocal(denom)     # exact reciprocal (approx=False)
        att_rows.append(jnp.dot(w, vb, preferred_element_type=jnp.float32))
    att = jnp.concatenate(att_rows, axis=0) if B > 1 else att_rows[0]  # (B*Sc, H)

    xa = jnp.dot(att, wo_ref[...], preferred_element_type=jnp.float32) + bo_ref[...]

    # residual layer norm + MLP (Linear -> GELU -> Linear) + residual
    zxa = layer_norm(z + xa)
    h = jnp.dot(zxa, w1_ref[...], preferred_element_type=jnp.float32) + b1_ref[...]
    h = _gelu_exact(h)
    mlp = jnp.dot(h, w2_ref[...], preferred_element_type=jnp.float32) + b2_ref[...]

    o_ref[...] = (zxa + mlp).astype(o_ref.dtype)


# ---------------------------------------------------------------------------
# Parameters (deterministic, PyTorch-like Linear init shapes: weight (out, in))
# ---------------------------------------------------------------------------
def init_params(key, hid_dim):
    H = hid_dim
    ks = jax.random.split(key, 10)

    def lin(kw, kb, fan_in, fan_out):
        bound = 1.0 / math.sqrt(fan_in)
        w = jax.random.uniform(kw, (fan_out, fan_in), jnp.float32, -bound, bound)
        b = jax.random.uniform(kb, (fan_out,), jnp.float32, -bound, bound)
        return w, b

    wq, bq = lin(ks[0], ks[1], H, H)
    wkv, bkv = lin(ks[2], ks[3], H, 2 * H)
    wo, bo = lin(ks[4], ks[5], H, H)
    w1, b1 = lin(ks[6], ks[7], H, H)
    w2, b2 = lin(ks[8], ks[9], H, H)
    return {
        "gamma": jnp.ones((H,), jnp.float32),
        "beta": jnp.zeros((H,), jnp.float32),
        "wq": wq, "bq": bq,
        "wkv": wkv, "bkv": bkv,
        "wo": wo, "bo": bo,
        "w1": w1, "b1": b1,
        "w2": w2, "b2": b2,
    }


# ---------------------------------------------------------------------------
# Wrapper (glue: slicing, expand(), transposes, weight re-layout, flattening)
# ---------------------------------------------------------------------------
def transformer_decoder(content, style, params):
    H = content.shape[-1]
    _content = content[1:, :, :]
    _style = style[1:, :, :]
    if _content.shape[1] == 1:
        _content = jnp.broadcast_to(_content, (_content.shape[0], _style.shape[1], H))
    elif _style.shape[1] == 1:
        _style = jnp.broadcast_to(_style, (_style.shape[0], _content.shape[1], H))

    c = jnp.transpose(_content, (1, 0, 2))  # (B, Sc, H)
    s = jnp.transpose(_style, (1, 0, 2))    # (B, Ss, H)
    B, Sc, _ = c.shape
    Ss = s.shape[1]

    # Batch-flattened 2D slabs for the kernel.
    c2d = c.reshape(B * Sc, H)
    s2d = s.reshape(B * Ss, H)

    p = params
    # Pre-transpose all weights to (in, out) so the kernel does x @ W + b.
    # fc_kv stays FUSED: (H, 2H); the kernel lane-slices k/v from one matmul.
    wq = p["wq"].T
    wkv = p["wkv"].T
    wo = p["wo"].T
    w1 = p["w1"].T
    w2 = p["w2"].T
    bq = p["bq"][None, :]
    bkv = p["bkv"][None, :]
    bo = p["bo"][None, :]
    b1 = p["b1"][None, :]
    b2 = p["b2"][None, :]
    gamma = p["gamma"][None, :]
    beta = p["beta"][None, :]

    kernel = functools.partial(decoder_kernel, B=B, Sc=Sc, Ss=Ss, H=H,
                               inv_scale=1.0 / math.sqrt(H))

    # Single grid step: no grid / BlockSpecs — every operand lives fully in
    # VMEM (a few KiB at this size), removing per-grid-step overhead entirely.
    out2d = pl.pallas_call(
        kernel,
        out_shape=jax.ShapeDtypeStruct((B * Sc, H), c.dtype),
    )(c2d, s2d, gamma, beta, wq, bq, wkv, bkv, wo, bo, w1, b1, w2, b2)

    out = out2d.reshape(B, Sc, H)
    return jnp.transpose(out, (1, 0, 2)), _style


# ---------------------------------------------------------------------------
# Plain-JAX reference (for correctness check only)
# ---------------------------------------------------------------------------
def reference(content, style, params):
    H = content.shape[-1]
    _content = content[1:, :, :]
    _style = style[1:, :, :]
    if _content.shape[1] == 1:
        _content = jnp.broadcast_to(_content, (_content.shape[0], _style.shape[1], H))
    elif _style.shape[1] == 1:
        _style = jnp.broadcast_to(_style, (_style.shape[0], _content.shape[1], H))
    c = jnp.transpose(_content, (1, 0, 2))
    s = jnp.transpose(_style, (1, 0, 2))

    def ln(x):
        mu = x.mean(-1, keepdims=True)
        var = ((x - mu) ** 2).mean(-1, keepdims=True)
        return (x - mu) / jnp.sqrt(var + 1e-5) * params["gamma"] + params["beta"]

    z = ln(c)
    q = z @ params["wq"].T + params["bq"]
    zs = ln(s)
    kv = zs @ params["wkv"].T + params["bkv"]
    k, v = kv[..., :H], kv[..., H:]
    dp = jnp.einsum("bqh,bkh->bqk", q, k) / math.sqrt(H)
    w = jax.nn.softmax(dp, axis=-1)
    xa = jnp.einsum("bqk,bkh->bqh", w, v) @ params["wo"].T + params["bo"]
    zxa = ln(z + xa)
    h = jax.nn.gelu(zxa @ params["w1"].T + params["b1"], approximate=False)
    m = h @ params["w2"].T + params["b2"]
    return jnp.transpose(zxa + m, (1, 0, 2)), _style


if __name__ == "__main__":
    hid_dim = 32
    Sc, Ss, B = 9, 9, 2   # first token is dropped inside forward -> seq len 8

    key = jax.random.PRNGKey(0)
    k_c, k_s, k_p = jax.random.split(key, 3)
    content = jax.random.normal(k_c, (Sc, B, hid_dim), jnp.float32)
    style = jax.random.normal(k_s, (Ss, B, hid_dim), jnp.float32)
    params = init_params(k_p, hid_dim)

    out, enc_style = transformer_decoder(content, style, params)
    out = jax.block_until_ready(out)
    enc_style = jax.block_until_ready(enc_style)

    ref_out, ref_style = reference(content, style, params)
    assert out.shape == (Sc - 1, B, hid_dim)
    assert enc_style.shape == (Ss - 1, B, hid_dim)
    assert jnp.allclose(out, ref_out, atol=1e-4, rtol=1e-4), "mismatch vs reference"
    assert jnp.allclose(enc_style, ref_style), "style passthrough mismatch"

    print("KERNEL_OK")
</pallas_src>

<mosaic_0001>
module attributes {stable_mosaic.version = 11 : i64} {
  func.func @decoder_kernel(%arg0: memref<16x32xf32, #tpu.memory_space<vmem>>, %arg1: memref<16x32xf32, #tpu.memory_space<vmem>>, %arg2: memref<1x32xf32, #tpu.memory_space<vmem>>, %arg3: memref<1x32xf32, #tpu.memory_space<vmem>>, %arg4: memref<32x32xf32, #tpu.memory_space<vmem>>, %arg5: memref<1x32xf32, #tpu.memory_space<vmem>>, %arg6: memref<32x64xf32, #tpu.memory_space<vmem>>, %arg7: memref<1x64xf32, #tpu.memory_space<vmem>>, %arg8: memref<32x32xf32, #tpu.memory_space<vmem>>, %arg9: memref<1x32xf32, #tpu.memory_space<vmem>>, %arg10: memref<32x32xf32, #tpu.memory_space<vmem>>, %arg11: memref<1x32xf32, #tpu.memory_space<vmem>>, %arg12: memref<32x32xf32, #tpu.memory_space<vmem>>, %arg13: memref<1x32xf32, #tpu.memory_space<vmem>>, %arg14: memref<16x32xf32, #tpu.memory_space<vmem>>) attributes {dimension_semantics = [], scalar_prefetch = 0 : i64, scratch_operands = 0 : i64, tpu.core_type = #tpu.core_type<tc>} {
    %c0 = arith.constant 0 : index
    %c0_0 = arith.constant 0 : index
    %0 = vector.load %arg2[%c0, %c0_0] : memref<1x32xf32, #tpu.memory_space<vmem>>, vector<1x32xf32>
    %c0_1 = arith.constant 0 : index
    %c0_2 = arith.constant 0 : index
    %1 = vector.load %arg3[%c0_1, %c0_2] : memref<1x32xf32, #tpu.memory_space<vmem>>, vector<1x32xf32>
    %c0_3 = arith.constant 0 : index
    %c0_4 = arith.constant 0 : index
    %2 = vector.load %arg0[%c0_3, %c0_4] : memref<16x32xf32, #tpu.memory_space<vmem>>, vector<16x32xf32>
    %c0_5 = arith.constant 0 : index
    %c0_6 = arith.constant 0 : index
    %3 = vector.load %arg1[%c0_5, %c0_6] : memref<16x32xf32, #tpu.memory_space<vmem>>, vector<16x32xf32>
    %cst = arith.constant dense<0.000000e+00> : vector<16xf32>
    %4 = vector.multi_reduction <add>, %2, %cst [1] : vector<16x32xf32> to vector<16xf32>
    %5 = vector.shape_cast %4 : vector<16xf32> to vector<16x1xf32>
    %cst_7 = arith.constant 3.200000e+01 : f32
    %6 = vector.broadcast %cst_7 : f32 to vector<16x1xf32>
    %7 = arith.divf %5, %6 : vector<16x1xf32>
    %8 = vector.broadcast %7 : vector<16x1xf32> to vector<16x32xf32>
    %9 = arith.subf %2, %8 : vector<16x32xf32>
    %10 = arith.mulf %9, %9 : vector<16x32xf32>
    %cst_8 = arith.constant dense<0.000000e+00> : vector<16xf32>
    %11 = vector.multi_reduction <add>, %10, %cst_8 [1] : vector<16x32xf32> to vector<16xf32>
    %12 = vector.shape_cast %11 : vector<16xf32> to vector<16x1xf32>
    %cst_9 = arith.constant 3.200000e+01 : f32
    %13 = vector.broadcast %cst_9 : f32 to vector<16x1xf32>
    %14 = arith.divf %12, %13 : vector<16x1xf32>
    %15 = vector.broadcast %7 : vector<16x1xf32> to vector<16x32xf32>
    %16 = arith.subf %2, %15 : vector<16x32xf32>
    %cst_10 = arith.constant 9.99999974E-6 : f32
    %17 = vector.broadcast %cst_10 : f32 to vector<16x1xf32>
    %18 = arith.addf %14, %17 : vector<16x1xf32>
    %19 = math.rsqrt %18 : vector<16x1xf32>
    %20 = vector.broadcast %19 : vector<16x1xf32> to vector<16x32xf32>
    %21 = arith.mulf %16, %20 : vector<16x32xf32>
    %22 = vector.broadcast %0 : vector<1x32xf32> to vector<16x32xf32>
    %23 = arith.mulf %21, %22 : vector<16x32xf32>
    %24 = vector.broadcast %1 : vector<1x32xf32> to vector<16x32xf32>
    %25 = arith.addf %23, %24 : vector<16x32xf32>
    %c0_11 = arith.constant 0 : index
    %c0_12 = arith.constant 0 : index
    %26 = vector.load %arg4[%c0_11, %c0_12] : memref<32x32xf32, #tpu.memory_space<vmem>>, vector<32x32xf32>
    %cst_13 = arith.constant dense<0.000000e+00> : vector<16x32xf32>
    %27 = tpu.matmul %25, %26, %cst_13 {dimension_numbers = #tpu.dot_dimension_numbers<[1], [0], [0], [1], [0, 0, 1, 1], [], []>} : vector<16x32xf32>, vector<32x32xf32>, vector<16x32xf32> -> vector<16x32xf32>
    %c0_14 = arith.constant 0 : index
    %c0_15 = arith.constant 0 : index
    %28 = vector.load %arg5[%c0_14, %c0_15] : memref<1x32xf32, #tpu.memory_space<vmem>>, vector<1x32xf32>
    %29 = vector.broadcast %28 : vector<1x32xf32> to vector<16x32xf32>
    %30 = arith.addf %27, %29 : vector<16x32xf32>
    %cst_16 = arith.constant dense<0.000000e+00> : vector<16xf32>
    %31 = vector.multi_reduction <add>, %3, %cst_16 [1] : vector<16x32xf32> to vector<16xf32>
    %32 = vector.shape_cast %31 : vector<16xf32> to vector<16x1xf32>
    %cst_17 = arith.constant 3.200000e+01 : f32
    %33 = vector.broadcast %cst_17 : f32 to vector<16x1xf32>
    %34 = arith.divf %32, %33 : vector<16x1xf32>
    %35 = vector.broadcast %34 : vector<16x1xf32> to vector<16x32xf32>
    %36 = arith.subf %3, %35 : vector<16x32xf32>
    %37 = arith.mulf %36, %36 : vector<16x32xf32>
    %cst_18 = arith.constant dense<0.000000e+00> : vector<16xf32>
    %38 = vector.multi_reduction <add>, %37, %cst_18 [1] : vector<16x32xf32> to vector<16xf32>
    %39 = vector.shape_cast %38 : vector<16xf32> to vector<16x1xf32>
    %cst_19 = arith.constant 3.200000e+01 : f32
    %40 = vector.broadcast %cst_19 : f32 to vector<16x1xf32>
    %41 = arith.divf %39, %40 : vector<16x1xf32>
    %42 = vector.broadcast %34 : vector<16x1xf32> to vector<16x32xf32>
    %43 = arith.subf %3, %42 : vector<16x32xf32>
    %cst_20 = arith.constant 9.99999974E-6 : f32
    %44 = vector.broadcast %cst_20 : f32 to vector<16x1xf32>
    %45 = arith.addf %41, %44 : vector<16x1xf32>
    %46 = math.rsqrt %45 : vector<16x1xf32>
    %47 = vector.broadcast %46 : vector<16x1xf32> to vector<16x32xf32>
    %48 = arith.mulf %43, %47 : vector<16x32xf32>
    %49 = vector.broadcast %0 : vector<1x32xf32> to vector<16x32xf32>
    %50 = arith.mulf %48, %49 : vector<16x32xf32>
    %51 = vector.broadcast %1 : vector<1x32xf32> to vector<16x32xf32>
    %52 = arith.addf %50, %51 : vector<16x32xf32>
    %c0_21 = arith.constant 0 : index
    %c0_22 = arith.constant 0 : index
    %53 = vector.load %arg6[%c0_21, %c0_22] : memref<32x64xf32, #tpu.memory_space<vmem>>, vector<32x64xf32>
    %cst_23 = arith.constant dense<0.000000e+00> : vector<16x64xf32>
    %54 = tpu.matmul %52, %53, %cst_23 {dimension_numbers = #tpu.dot_dimension_numbers<[1], [0], [0], [1], [0, 0, 1, 1], [], []>} : vector<16x32xf32>, vector<32x64xf32>, vector<16x64xf32> -> vector<16x64xf32>
    %c0_24 = arith.constant 0 : index
    %c0_25 = arith.constant 0 : index
    %55 = vector.load %arg7[%c0_24, %c0_25] : memref<1x64xf32, #tpu.memory_space<vmem>>, vector<1x64xf32>
    %56 = vector.broadcast %55 : vector<1x64xf32> to vector<16x64xf32>
    %57 = arith.addf %54, %56 : vector<16x64xf32>
    %58 = vector.extract_strided_slice %57 {offsets = [0, 0], sizes = [16, 32], strides = [1, 1]} : vector<16x64xf32> to vector<16x32xf32>
    %59 = vector.extract_strided_slice %57 {offsets = [0, 32], sizes = [16, 32], strides = [1, 1]} : vector<16x64xf32> to vector<16x32xf32>
    %60 = vector.extract_strided_slice %30 {offsets = [0, 0], sizes = [8, 32], strides = [1, 1]} : vector<16x32xf32> to vector<8x32xf32>
    %61 = vector.extract_strided_slice %58 {offsets = [0, 0], sizes = [8, 32], strides = [1, 1]} : vector<16x32xf32> to vector<8x32xf32>
    %62 = vector.extract_strided_slice %59 {offsets = [0, 0], sizes = [8, 32], strides = [1, 1]} : vector<16x32xf32> to vector<8x32xf32>
    %cst_26 = arith.constant dense<0.000000e+00> : vector<8x8xf32>
    %63 = tpu.matmul %60, %61, %cst_26 {dimension_numbers = #tpu.dot_dimension_numbers<[1], [1], [0], [0], [0, 0, 1, 0], [], []>} : vector<8x32xf32>, vector<8x32xf32>, vector<8x8xf32> -> vector<8x8xf32>
    %cst_27 = arith.constant 0.176776692 : f32
    %64 = vector.broadcast %cst_27 : f32 to vector<8x8xf32>
    %65 = arith.mulf %63, %64 : vector<8x8xf32>
    %cst_28 = arith.constant dense<0xFF800000> : vector<8xf32>
    %66 = vector.multi_reduction <maximumf>, %65, %cst_28 [1] : vector<8x8xf32> to vector<8xf32>
    %67 = vector.shape_cast %66 : vector<8xf32> to vector<8x1xf32>
    %68 = vector.broadcast %67 : vector<8x1xf32> to vector<8x8xf32>
    %69 = arith.subf %65, %68 : vector<8x8xf32>
    %70 = math.exp %69 : vector<8x8xf32>
    %cst_29 = arith.constant dense<0.000000e+00> : vector<8xf32>
    %71 = vector.multi_reduction <add>, %70, %cst_29 [1] : vector<8x8xf32> to vector<8xf32>
    %72 = vector.shape_cast %71 : vector<8xf32> to vector<8x1xf32>
    %73 = tpu.reciprocal %72 : vector<8x1xf32> -> vector<8x1xf32>
    %74 = vector.broadcast %73 : vector<8x1xf32> to vector<8x8xf32>
    %75 = arith.mulf %70, %74 : vector<8x8xf32>
    %cst_30 = arith.constant dense<0.000000e+00> : vector<8x32xf32>
    %76 = tpu.matmul %75, %62, %cst_30 {dimension_numbers = #tpu.dot_dimension_numbers<[1], [0], [0], [1], [0, 0, 1, 1], [], []>} : vector<8x8xf32>, vector<8x32xf32>, vector<8x32xf32> -> vector<8x32xf32>
    %77 = vector.extract_strided_slice %30 {offsets = [8, 0], sizes = [8, 32], strides = [1, 1]} : vector<16x32xf32> to vector<8x32xf32>
    %78 = vector.extract_strided_slice %58 {offsets = [8, 0], sizes = [8, 32], strides = [1, 1]} : vector<16x32xf32> to vector<8x32xf32>
    %79 = vector.extract_strided_slice %59 {offsets = [8, 0], sizes = [8, 32], strides = [1, 1]} : vector<16x32xf32> to vector<8x32xf32>
    %cst_31 = arith.constant dense<0.000000e+00> : vector<8x8xf32>
    %80 = tpu.matmul %77, %78, %cst_31 {dimension_numbers = #tpu.dot_dimension_numbers<[1], [1], [0], [0], [0, 0, 1, 0], [], []>} : vector<8x32xf32>, vector<8x32xf32>, vector<8x8xf32> -> vector<8x8xf32>
    %cst_32 = arith.constant 0.176776692 : f32
    %81 = vector.broadcast %cst_32 : f32 to vector<8x8xf32>
    %82 = arith.mulf %80, %81 : vector<8x8xf32>
    %cst_33 = arith.constant dense<0xFF800000> : vector<8xf32>
    %83 = vector.multi_reduction <maximumf>, %82, %cst_33 [1] : vector<8x8xf32> to vector<8xf32>
    %84 = vector.shape_cast %83 : vector<8xf32> to vector<8x1xf32>
    %85 = vector.broadcast %84 : vector<8x1xf32> to vector<8x8xf32>
    %86 = arith.subf %82, %85 : vector<8x8xf32>
    %87 = math.exp %86 : vector<8x8xf32>
    %cst_34 = arith.constant dense<0.000000e+00> : vector<8xf32>
    %88 = vector.multi_reduction <add>, %87, %cst_34 [1] : vector<8x8xf32> to vector<8xf32>
    %89 = vector.shape_cast %88 : vector<8xf32> to vector<8x1xf32>
    %90 = tpu.reciprocal %89 : vector<8x1xf32> -> vector<8x1xf32>
    %91 = vector.broadcast %90 : vector<8x1xf32> to vector<8x8xf32>
    %92 = arith.mulf %87, %91 : vector<8x8xf32>
    %cst_35 = arith.constant dense<0.000000e+00> : vector<8x32xf32>
    %93 = tpu.matmul %92, %79, %cst_35 {dimension_numbers = #tpu.dot_dimension_numbers<[1], [0], [0], [1], [0, 0, 1, 1], [], []>} : vector<8x8xf32>, vector<8x32xf32>, vector<8x32xf32> -> vector<8x32xf32>
    %94 = tpu.concatenate %76, %93 in 0 : vector<8x32xf32>, vector<8x32xf32> -> vector<16x32xf32>
    %c0_36 = arith.constant 0 : index
    %c0_37 = arith.constant 0 : index
    %95 = vector.load %arg8[%c0_36, %c0_37] : memref<32x32xf32, #tpu.memory_space<vmem>>, vector<32x32xf32>
    %cst_38 = arith.constant dense<0.000000e+00> : vector<16x32xf32>
    %96 = tpu.matmul %94, %95, %cst_38 {dimension_numbers = #tpu.dot_dimension_numbers<[1], [0], [0], [1], [0, 0, 1, 1], [], []>} : vector<16x32xf32>, vector<32x32xf32>, vector<16x32xf32> -> vector<16x32xf32>
    %c0_39 = arith.constant 0 : index
    %c0_40 = arith.constant 0 : index
    %97 = vector.load %arg9[%c0_39, %c0_40] : memref<1x32xf32, #tpu.memory_space<vmem>>, vector<1x32xf32>
    %98 = vector.broadcast %97 : vector<1x32xf32> to vector<16x32xf32>
    %99 = arith.addf %96, %98 : vector<16x32xf32>
    %100 = arith.addf %25, %99 : vector<16x32xf32>
    %cst_41 = arith.constant dense<0.000000e+00> : vector<16xf32>
    %101 = vector.multi_reduction <add>, %100, %cst_41 [1] : vector<16x32xf32> to vector<16xf32>
    %102 = vector.shape_cast %101 : vector<16xf32> to vector<16x1xf32>
    %cst_42 = arith.constant 3.200000e+01 : f32
    %103 = vector.broadcast %cst_42 : f32 to vector<16x1xf32>
    %104 = arith.divf %102, %103 : vector<16x1xf32>
    %105 = vector.broadcast %104 : vector<16x1xf32> to vector<16x32xf32>
    %106 = arith.subf %100, %105 : vector<16x32xf32>
    %107 = arith.mulf %106, %106 : vector<16x32xf32>
    %cst_43 = arith.constant dense<0.000000e+00> : vector<16xf32>
    %108 = vector.multi_reduction <add>, %107, %cst_43 [1] : vector<16x32xf32> to vector<16xf32>
    %109 = vector.shape_cast %108 : vector<16xf32> to vector<16x1xf32>
    %cst_44 = arith.constant 3.200000e+01 : f32
    %110 = vector.broadcast %cst_44 : f32 to vector<16x1xf32>
    %111 = arith.divf %109, %110 : vector<16x1xf32>
    %112 = vector.broadcast %104 : vector<16x1xf32> to vector<16x32xf32>
    %113 = arith.subf %100, %112 : vector<16x32xf32>
    %cst_45 = arith.constant 9.99999974E-6 : f32
    %114 = vector.broadcast %cst_45 : f32 to vector<16x1xf32>
    %115 = arith.addf %111, %114 : vector<16x1xf32>
    %116 = math.rsqrt %115 : vector<16x1xf32>
    %117 = vector.broadcast %116 : vector<16x1xf32> to vector<16x32xf32>
    %118 = arith.mulf %113, %117 : vector<16x32xf32>
    %119 = vector.broadcast %0 : vector<1x32xf32> to vector<16x32xf32>
    %120 = arith.mulf %118, %119 : vector<16x32xf32>
    %121 = vector.broadcast %1 : vector<1x32xf32> to vector<16x32xf32>
    %122 = arith.addf %120, %121 : vector<16x32xf32>
    %c0_46 = arith.constant 0 : index
    %c0_47 = arith.constant 0 : index
    %123 = vector.load %arg10[%c0_46, %c0_47] : memref<32x32xf32, #tpu.memory_space<vmem>>, vector<32x32xf32>
    %cst_48 = arith.constant dense<0.000000e+00> : vector<16x32xf32>
    %124 = tpu.matmul %122, %123, %cst_48 {dimension_numbers = #tpu.dot_dimension_numbers<[1], [0], [0], [1], [0, 0, 1, 1], [], []>} : vector<16x32xf32>, vector<32x32xf32>, vector<16x32xf32> -> vector<16x32xf32>
    %c0_49 = arith.constant 0 : index
    %c0_50 = arith.constant 0 : index
    %125 = vector.load %arg11[%c0_49, %c0_50] : memref<1x32xf32, #tpu.memory_space<vmem>>, vector<1x32xf32>
    %126 = vector.broadcast %125 : vector<1x32xf32> to vector<16x32xf32>
    %127 = arith.addf %124, %126 : vector<16x32xf32>
    %cst_51 = arith.constant 5.000000e-01 : f32
    %128 = vector.broadcast %cst_51 : f32 to vector<16x32xf32>
    %129 = arith.mulf %128, %127 : vector<16x32xf32>
    %cst_52 = arith.constant 0.707106769 : f32
    %130 = vector.broadcast %cst_52 : f32 to vector<16x32xf32>
    %131 = arith.mulf %127, %130 : vector<16x32xf32>
    %cst_53 = arith.constant 0.000000e+00 : f32
    %132 = vector.broadcast %cst_53 : f32 to vector<16x32xf32>
    %133 = arith.cmpf oge, %131, %132 : vector<16x32xf32>
    %cst_54 = arith.constant 1.000000e+00 : f32
    %cst_55 = arith.constant -1.000000e+00 : f32
    %134 = vector.broadcast %cst_54 : f32 to vector<16x32xf32>
    %135 = vector.broadcast %cst_55 : f32 to vector<16x32xf32>
    %136 = arith.select %133, %134, %135 : vector<16x32xi1>, vector<16x32xf32>
    %137 = math.absf %131 : vector<16x32xf32>
    %cst_56 = arith.constant 0.327591091 : f32
    %138 = vector.broadcast %cst_56 : f32 to vector<16x32xf32>
    %139 = arith.mulf %138, %137 : vector<16x32xf32>
    %cst_57 = arith.constant 1.000000e+00 : f32
    %140 = vector.broadcast %cst_57 : f32 to vector<16x32xf32>
    %141 = arith.addf %140, %139 : vector<16x32xf32>
    %cst_58 = arith.constant 1.000000e+00 : f32
    %142 = vector.broadcast %cst_58 : f32 to vector<16x32xf32>
    %143 = arith.divf %142, %141 : vector<16x32xf32>
    %cst_59 = arith.constant 1.06140542 : f32
    %144 = vector.broadcast %cst_59 : f32 to vector<16x32xf32>
    %145 = arith.mulf %144, %143 : vector<16x32xf32>
    %cst_60 = arith.constant -1.45315206 : f32
    %146 = vector.broadcast %cst_60 : f32 to vector<16x32xf32>
    %147 = arith.addf %145, %146 : vector<16x32xf32>
    %148 = arith.mulf %147, %143 : vector<16x32xf32>
    %cst_61 = arith.constant 1.42141378 : f32
    %149 = vector.broadcast %cst_61 : f32 to vector<16x32xf32>
    %150 = arith.addf %148, %149 : vector<16x32xf32>
    %151 = arith.mulf %150, %143 : vector<16x32xf32>
    %cst_62 = arith.constant -0.284496725 : f32
    %152 = vector.broadcast %cst_62 : f32 to vector<16x32xf32>
    %153 = arith.addf %151, %152 : vector<16x32xf32>
    %154 = arith.mulf %153, %143 : vector<16x32xf32>
    %cst_63 = arith.constant 0.254829586 : f32
    %155 = vector.broadcast %cst_63 : f32 to vector<16x32xf32>
    %156 = arith.addf %154, %155 : vector<16x32xf32>
    %157 = arith.mulf %156, %143 : vector<16x32xf32>
    %cst_64 = arith.constant 0.000000e+00 : f32
    %158 = vector.broadcast %cst_64 : f32 to vector<16x32xf32>
    %159 = arith.subf %158, %137 : vector<16x32xf32>
    %160 = arith.mulf %159, %137 : vector<16x32xf32>
    %161 = math.exp %160 : vector<16x32xf32>
    %162 = arith.mulf %157, %161 : vector<16x32xf32>
    %cst_65 = arith.constant 1.000000e+00 : f32
    %163 = vector.broadcast %cst_65 : f32 to vector<16x32xf32>
    %164 = arith.subf %163, %162 : vector<16x32xf32>
    %165 = arith.mulf %136, %164 : vector<16x32xf32>
    %cst_66 = arith.constant 1.000000e+00 : f32
    %166 = vector.broadcast %cst_66 : f32 to vector<16x32xf32>
    %167 = arith.addf %166, %165 : vector<16x32xf32>
    %168 = arith.mulf %129, %167 : vector<16x32xf32>
    %c0_67 = arith.constant 0 : index
    %c0_68 = arith.constant 0 : index
    %169 = vector.load %arg12[%c0_67, %c0_68] : memref<32x32xf32, #tpu.memory_space<vmem>>, vector<32x32xf32>
    %cst_69 = arith.constant dense<0.000000e+00> : vector<16x32xf32>
    %170 = tpu.matmul %168, %169, %cst_69 {dimension_numbers = #tpu.dot_dimension_numbers<[1], [0], [0], [1], [0, 0, 1, 1], [], []>} : vector<16x32xf32>, vector<32x32xf32>, vector<16x32xf32> -> vector<16x32xf32>
    %c0_70 = arith.constant 0 : index
    %c0_71 = arith.constant 0 : index
    %171 = vector.load %arg13[%c0_70, %c0_71] : memref<1x32xf32, #tpu.memory_space<vmem>>, vector<1x32xf32>
    %172 = vector.broadcast %171 : vector<1x32xf32> to vector<16x32xf32>
    %173 = arith.addf %170, %172 : vector<16x32xf32>
    %174 = arith.addf %122, %173 : vector<16x32xf32>
    %c0_72 = arith.constant 0 : index
    %c0_73 = arith.constant 0 : index
    %175 = vector.load %arg14[%c0_72, %c0_73] : memref<16x32xf32, #tpu.memory_space<vmem>>, vector<16x32xf32>
    tpu.vector_store %arg14[%c0_72, %c0_73], %174 {strides = array<i32>} : memref<16x32xf32, #tpu.memory_space<vmem>>, vector<16x32xf32>,
    return
  }
}

</mosaic_0001>

<bundles_post_ra>
// kernel: tpu_custom_call.1
= control target key start
LH: loop header
LB: loop body
LE: loop exit
PB: predicated region body
PF: predicated region fallthrough
CT: control target
= control target key end

     0   :  { %19 = vsyncpa [#allocation3], 0  ;;  %s1820_s0 = inlined_call_operand.hbm [shape: f32[16,32], index: 0, kind: input, shape index: {}]   ;;  %s1821_s1 = inlined_call_operand.hbm [shape: f32[16,32], index: 1, kind: input, shape index: {}]   ;;  %s1822_s2 = inlined_call_operand.vmem [shape: f32[1,32], index: 2, kind: input, shape index: {}]   ;;  %s1823_s3 = inlined_call_operand.vmem [shape: f32[1,32], index: 3, kind: input, shape index: {}]   ;;  %s1824_s4 = inlined_call_operand.hbm [shape: f32[32,32], index: 4, kind: input, shape index: {}]   ;;  %s1825_s5 = inlined_call_operand.vmem [shape: f32[1,32], index: 5, kind: input, shape index: {}]   ;;  %s1826_s6 = inlined_call_operand.hbm [shape: f32[32,64], index: 6, kind: input, shape index: {}]   ;;  %s1827_s7 = inlined_call_operand.vmem [shape: f32[1,64], index: 7, kind: input, shape index: {}]   ;;  %s1828_s8 = inlined_call_operand.hbm [shape: f32[32,32], index: 8, kind: input, shape index: {}]   ;;  %s1829_s9 = inlined_call_operand.vmem [shape: f32[1,32], index: 9, kind: input, shape index: {}]   ;;  %s1830_s10 = inlined_call_operand.vmem [shape: f32[32,32], index: 10, kind: input, shape index: {}]   ;;  %s1831_s11 = inlined_call_operand.vmem [shape: f32[1,32], index: 11, kind: input, shape index: {}]   ;;  %s1832_s12 = inlined_call_operand.hbm [shape: f32[32,32], index: 12, kind: input, shape index: {}]   ;;  %s1833_s13 = inlined_call_operand.vmem [shape: f32[1,32], index: 13, kind: input, shape index: {}]   ;;  %s1834_s14 = inlined_call_operand.hbm [shape: f32[16,32], index: 14, kind: output, shape index: {}]  }
   0x1   :  { %20 = vsyncpa [#allocation6], 0 }
   0x2   :  { %21 = vsyncpa [#allocation9], 0 }
   0x3   :  { %22 = vsyncpa [#allocation12], 0 }
   0x4   :  { %23 = vsyncpa [#allocation4], 0  ;;  %s1490_s29 = smov [#allocation5]   ;;  %s1491_s15 = smov [#allocation8]  }
   0x5   :  { %s41_s30 = sshll.u32 %s1490_s29, 4  ;;  %s71_s16 = sshll.u32 %s1491_s15, 4  ;;  %s42_s30 = int_to_ptr.vmem [resolvable:$true] %s41_s30  ;;  %s1578_s16 = int_to_ptr.vmem [resolvable:$true] %s71_s16 }
   0x6   :  { %s1326_s19 = scalar_lea.hbm %s1821_s1, 256 }
   0x7   :  { %p1327_p0 = scmp.ne.s32.totalorder %s1821_s1, %s1326_s19  ;;  %p1330_p1 = scmp.lt.u32.totalorder %s1326_s19, %s1821_s1 }
   0x9   :  { %p1332_p2 = pnand %p1330_p1, %p1327_p0 }
   0xb   :  { %1335 = shalt.err (!%p1332_p2)
}
   0xc   :  { %s1336_s24 = scalar_lea.vmem %s42_s30, 256  ;;  %p1341_p4 = scmp.lt.s32.totalorder %s42_s30, %s42_s30 }
   0xd   :  { %p1337_p3 = scmp.ne.s32.totalorder %s42_s30, %s1336_s24  ;;  %p1342_p5 = scmp.lt.s32.totalorder %s1336_s24, %s1336_s24 }
   0xf   :  { %p1343_p6 = por %p1342_p5, %p1341_p4 }
  0x11   :  { %p1344_p7 = pnand %p1343_p6, %p1337_p3 }
  0x13   :  { %1347 = shalt.err (!%p1344_p7)
}
  0x14   :  { %s1492_s25 = smov 128   ;;  %s1493_s26 = smov 8  }
  0x15   :  { %47 = dma.hbm_to_vmem [thread:$0]  %s1821_s1, 256, %s42_s30, [#allocation6], %s1492_s25, %s1492_s25, %s1493_s26  }
  0x16   :  { %s1348_s17 = scalar_lea.hbm %s1826_s6, 512 }
  0x17   :  { %p1349_p8 = scmp.ne.s32.totalorder %s1826_s6, %s1348_s17  ;;  %p1352_p9 = scmp.lt.u32.totalorder %s1348_s17, %s1826_s6 }
  0x19   :  { %p1354_p10 = pnand %p1352_p9, %p1349_p8 }
  0x1b   :  { %1357 = shalt.err (!%p1354_p10)
}
  0x1c   :  { %s1358_s22 = scalar_lea.vmem %s1578_s16, 512  ;;  %p1363_p12 = scmp.lt.s32.totalorder %s1578_s16, %s1578_s16 }
  0x1d   :  { %p1359_p11 = scmp.ne.s32.totalorder %s1578_s16, %s1358_s22  ;;  %p1364_p13 = scmp.lt.s32.totalorder %s1358_s22, %s1358_s22 }
  0x1f   :  { %p1365_p0 = por %p1364_p13, %p1363_p12 }
  0x21   :  { %p1366_p1 = pnand %p1365_p0, %p1359_p11 }
  0x23   :  { %1369 = shalt.err (!%p1366_p1)
}
  0x24   :  { %77 = dma.hbm_to_vmem [thread:$0]  %s1826_s6, 512, %s1578_s16, [#allocation9], %s1492_s25, %s1492_s25, %s1493_s26  }
  0x25   :  { %s1494_s23 = smov [#allocation2]   ;;  %s1495_s27 = smov [#allocation7]  }
  0x26   :  { %s29_s24 = sshll.u32 %s1494_s23, 4  ;;  %s57_s28 = sshll.u32 %s1495_s27, 4  ;;  %s30_s24 = int_to_ptr.vmem [resolvable:$true] %s29_s24  ;;  %s1615_s28 = int_to_ptr.vmem [resolvable:$true] %s57_s28 }
  0x27   :  { %s1370_s17 = scalar_lea.hbm %s1820_s0, 256 }
  0x28   :  { %p1371_p2 = scmp.ne.s32.totalorder %s1820_s0, %s1370_s17  ;;  %p1374_p3 = scmp.lt.u32.totalorder %s1370_s17, %s1820_s0 }
  0x2a   :  { %p1376_p4 = pnand %p1374_p3, %p1371_p2 }
  0x2c   :  { %1379 = shalt.err (!%p1376_p4)
}
  0x2d   :  { %s1380_s6 = scalar_lea.vmem %s30_s24, 256  ;;  %p1385_p6 = scmp.lt.s32.totalorder %s30_s24, %s30_s24 }
  0x2e   :  { %p1381_p5 = scmp.ne.s32.totalorder %s30_s24, %s1380_s6  ;;  %p1386_p7 = scmp.lt.s32.totalorder %s1380_s6, %s1380_s6 }
  0x30   :  { %p1387_p8 = por %p1386_p7, %p1385_p6 }
  0x32   :  { %p1388_p9 = pnand %p1387_p8, %p1381_p5 }
  0x34   :  { %1391 = shalt.err (!%p1388_p9)
}
  0x35   :  { %35 = dma.hbm_to_vmem [thread:$0]  %s1820_s0, 256, %s30_s24, [#allocation3], %s1492_s25, %s1492_s25, %s1493_s26  }
  0x36   :  { %s1392_s23 = scalar_lea.hbm %s1824_s4, 512 }
  0x37   :  { %p1393_p10 = scmp.ne.s32.totalorder %s1824_s4, %s1392_s23  ;;  %p1396_p11 = scmp.lt.u32.totalorder %s1392_s23, %s1824_s4 }
  0x39   :  { %p1398_p12 = pnand %p1396_p11, %p1393_p10 }
  0x3b   :  { %1401 = shalt.err (!%p1398_p12)
}
  0x3c   :  { %s1402_s18 = scalar_lea.vmem %s1615_s28, 512  ;;  %p1407_p0 = scmp.lt.s32.totalorder %s1615_s28, %s1615_s28 }
  0x3d   :  { %p1403_p13 = scmp.ne.s32.totalorder %s1615_s28, %s1402_s18  ;;  %p1408_p1 = scmp.lt.s32.totalorder %s1402_s18, %s1402_s18 }
  0x3f   :  { %p1409_p2 = por %p1408_p1, %p1407_p0 }
  0x41   :  { %p1410_p3 = pnand %p1409_p2, %p1403_p13 }
  0x43   :  { %1413 = shalt.err (!%p1410_p3)
}
  0x44   :  { %63 = dma.hbm_to_vmem [thread:$0]  %s1824_s4, 512, %s1615_s28, [#allocation6], %s1492_s25, %s1492_s25, %s1493_s26  }
  0x45   :  { %s1496_s19 = smov [#allocation10]   ;;  %s1497_s21 = smov [#allocation11]  }
  0x46   :  { %s85_s20 = sshll.u32 %s1496_s19, 4  ;;  %s103_s6 = sshll.u32 %s1497_s21, 4  ;;  %s86_s20 = int_to_ptr.vmem [resolvable:$true] %s85_s20  ;;  %s1652_s6 = int_to_ptr.vmem [resolvable:$true] %s103_s6 }
  0x47   :  { %s1414_s1 = scalar_lea.hbm %s1828_s8, 512 }
  0x48   :  { %p1415_p4 = scmp.ne.s32.totalorder %s1828_s8, %s1414_s1  ;;  %p1418_p5 = scmp.lt.u32.totalorder %s1414_s1, %s1828_s8 }
  0x4a   :  { %p1420_p6 = pnand %p1418_p5, %p1415_p4 }
  0x4c   :  { %1423 = shalt.err (!%p1420_p6)
}
  0x4d   :  { %s1424_s4 = scalar_lea.vmem %s86_s20, 512  ;;  %p1429_p8 = scmp.lt.s32.totalorder %s86_s20, %s86_s20 }
  0x4e   :  { %p1425_p7 = scmp.ne.s32.totalorder %s86_s20, %s1424_s4  ;;  %p1430_p9 = scmp.lt.s32.totalorder %s1424_s4, %s1424_s4 }
  0x50   :  { %p1431_p10 = por %p1430_p9, %p1429_p8 }
  0x52   :  { %p1432_p11 = pnand %p1431_p10, %p1425_p7 }
  0x54   :  { %1435 = shalt.err (!%p1432_p11)
}
  0x55   :  { %91 = dma.hbm_to_vmem [thread:$0]  %s1828_s8, 512, %s86_s20, [#allocation9], %s1492_s25, %s1492_s25, %s1493_s26  }
  0x56   :  { %s1436_s0 = scalar_lea.hbm %s1832_s12, 512 }
  0x57   :  { %p1437_p12 = scmp.ne.s32.totalorder %s1832_s12, %s1436_s0  ;;  %p1440_p13 = scmp.lt.u32.totalorder %s1436_s0, %s1832_s12 }
  0x59   :  { %p1442_p0 = pnand %p1440_p13, %p1437_p12 }
  0x5b   :  { %1445 = shalt.err (!%p1442_p0)
}
  0x5c   :  { %s1446_s22 = scalar_lea.vmem %s1652_s6, 512  ;;  %p1451_p2 = scmp.lt.s32.totalorder %s1652_s6, %s1652_s6 }
  0x5d   :  { %p1447_p1 = scmp.ne.s32.totalorder %s1652_s6, %s1446_s22  ;;  %p1452_p3 = scmp.lt.s32.totalorder %s1446_s22, %s1446_s22 }
  0x5f   :  { %p1453_p4 = por %p1452_p3, %p1451_p2 }
  0x61   :  { %p1454_p5 = pnand %p1453_p4, %p1447_p1 }
  0x63   :  { %1457 = shalt.err (!%p1454_p5)
}
  0x64   :  { %109 = dma.hbm_to_vmem [thread:$0]  %s1832_s12, 512, %s1652_s6, [#allocation12], %s1492_s25, %s1492_s25, %s1493_s26  }
  0x65   :  { %1480 = dma.done.wait [#allocation3], 256  }
  0x66   :  { %1481 = vsyncadd [#allocation3], 4294967040 }
  0x67   :  { %1482 = dma.done.wait [#allocation6], 768  }
  0x68   :  { %1483 = vsyncadd [#allocation6], 4294966528 }
  0x69   :  { %1484 = dma.done.wait [#allocation9], 1024  }
  0x6a   :  { %1485 = vsyncadd [#allocation9], 4294966272 }
  0x6b   :  { %1486 = dma.done.wait [#allocation12], 512  }
  0x6c   :  { %1487 = vsyncadd [#allocation12], 4294966784  ;;  %vm136_vm0 = vcmask 261120   ;;  %v134_v0 = vld [vmem:[#allocation5] sm:$0xff]  ;;  %v135_v1 = vld [vmem:[#allocation5 + $0x8] sm:$0xff]  ;;  %vm1499_vm1 = vmmov 0  }
  0x6d   :  { %v132_v2 = vld [vmem:[#allocation2] sm:$0xff]  ;;  %v272_v3 = vsel %vm136_vm0, %v134_v0, 0.0  ;;  %v133_v5 = vld [vmem:[#allocation2 + $0x8] sm:$0xff]  ;;  %v275_v6 = vsel %vm136_vm0, %v135_v1, 0.0  ;;  %v304_v33 = vld [vmem:[#allocation8 + $0x10] sm:$0xff]  ;;  %vm471_vm2 = vcmask 64512  }
  0x6e   :  { %v137_v4 = vsel %vm136_vm0, %v132_v2, 0.0  ;;  %273 = vadd.xlane.f32.xlu0 %v272_v3  ;;  %v140_v7 = vsel %vm136_vm0, %v133_v5, 0.0  ;;  %v302_v28 = vld [vmem:[#allocation8] sm:$0xff]  ;;  %v303_v29 = vld [vmem:[#allocation8 + $0x8] sm:$0xff]  ;;  %v305_v34 = vld [vmem:[#allocation8 + $0x18] sm:$0xff]  ;;  %s1502_s16 = smov [#allocation13]  }
  0x6f   :  { %138 = vadd.xlane.f32.xlu1 %v137_v4  ;;  %v180_v30 = vld [vmem:[#allocation7] sm:$0xff]  ;;  %v1253_v31 = vpack.c.bf16 %v303_v29, %v302_v28  ;;  %v181_v32 = vld [vmem:[#allocation7 + $0x8] sm:$0xff]  ;;  %v1257_v36 = vpack.c.bf16 %v305_v34, %v304_v33  ;;  %v182_v37 = vld [vmem:[#allocation7 + $0x10] sm:$0xff]  ;;  %s1094_s22 = sshll.u32 %s1502_s16, 4  ;;  %s1095_s22 = int_to_ptr.vmem [resolvable:$true] %s1094_s22 }
  0x70   :  { %v1245_v35 = vpack.c.bf16 %v181_v32, %v180_v30  ;;  %v183_v38 = vld [vmem:[#allocation7 + $0x18] sm:$0xff]  ;;  %v1704_v53 = vld [vmem:[%s1822_s2] ss:$0 sm:$0xff]  ;;  %s1458_s8 = scalar_lea.vmem %s1095_s22, 256  ;;  %p1463_p7 = scmp.lt.s32.totalorder %s1095_s22, %s1095_s22 }
  0x71   :  { %1254 = vmatprep.subr.bf16.mxu1 %v1253_v31  ;;  %v1249_v39 = vpack.c.bf16 %v183_v38, %v182_v37  ;;  %v1709_v55 = vld [vmem:[%s1823_s3] ss:$0 sm:$0xff]  ;;  %p1459_p6 = scmp.ne.s32.totalorder %s1095_s22, %s1458_s8  ;;  %p1464_p8 = scmp.lt.s32.totalorder %s1458_s8, %s1458_s8 }
  0x72   :  { %276 = vadd.xlane.f32.xlu0 %v275_v6  ;;  %1256 = vmatpush3.bf16.msra.mxu1 %v1253_v31  ;;  %v1498_v6 = vmov 0.0  }
  0x73   :  { %141 = vadd.xlane.f32.xlu1 %v140_v7  ;;  %1246 = vmatprep.subr.bf16.mxu0 %v1245_v35  ;;  %v1114_v7 = vld [vmem:[%s1827_s7] ss:$0 sm:$0xff]  ;;  %p1465_p9 = por %p1464_p8, %p1463_p7 }
  0x74   :  { %1258 = vmatprep.subr.bf16.mxu1 %v1257_v36  ;;  %1248 = vmatpush3.bf16.msra.mxu0 %v1245_v35  ;;  %v723_v35 = vld [vmem:[#allocation10] sm:$0xff] }
  0x75   :  { %1250 = vmatprep.subr.bf16.mxu0 %v1249_v39  ;;  %p1466_p10 = pnand %p1465_p9, %p1459_p6 }
  0x76   :  { %1260 = vmatpush3.bf16.msra.mxu1 %v1257_v36  ;;  %v724_v36 = vld [vmem:[#allocation10 + $0x8] sm:$0xff] }
  0x77   :  { %1192 = vmatprep.subr.mxu1 %v1498_v6  ;;  %v1261_v37 = vpack.c.bf16 %v724_v36, %v723_v35 }
  0x78   :  { %1252 = vmatpush3.bf16.msra.mxu0 %v1249_v39 }
  0x79   :  { %1202 = vmatprep.subr.mxu0 %v1498_v6 }
  0xfb   :  { %v274_v8 = vpop.xlane.xlu0 %273 }
  0xfc   :  { %v139_v9 = vpop.xlane.xlu1 %138  ;;  %v278_v10 = vmul.f32 0.03125, %v274_v8 }
  0xfd   :  { %v144_v11 = vmul.f32 0.03125, %v139_v9 }
  0xfe   :  { %v280_v12 = vsub.f32 %v134_v0, %v278_v10 }
  0xff   :  { %v1693_v13 = vsub.f32 %v132_v2, %v144_v11  ;;  %v277_v14 = vpop.xlane.xlu0 %276  ;;  %v1111_v11 = vld [vmem:[%s1825_s5] ss:$0 sm:$0xff]  ;;  %s1500_s5 = smov 96  }
 0x100   :  { %v142_v15 = vpop.xlane.xlu1 %141  ;;  %v279_v16 = vmul.f32 0.03125, %v277_v14  ;;  %v282_v17 = vmul.f32 %v280_v12, %v280_v12 }
 0x101   :  { %v145_v18 = vmul.f32 0.03125, %v142_v15  ;;  %v148_v19 = vmul.f32 %v1693_v13, %v1693_v13 }
 0x102   :  { %v281_v20 = vsub.f32 %v135_v1, %v279_v16  ;;  %v284_v21 = vsel %vm136_vm0, %v282_v17, 0.0 }
 0x103   :  { %v147_v22 = vsub.f32 %v133_v5, %v145_v18  ;;  %285 = vadd.xlane.f32.xlu0 %v284_v21  ;;  %v150_v24 = vsel %vm136_vm0, %v148_v19, 0.0 }
 0x104   :  { %v283_v23 = vmul.f32 %v281_v20, %v281_v20 }
 0x105   :  { %v149_v25 = vmul.f32 %v147_v22, %v147_v22 }
 0x106   :  { %v287_v26 = vsel %vm136_vm0, %v283_v23, 0.0 }
 0x107   :  { %288 = vadd.xlane.f32.xlu1 %v287_v26  ;;  %151 = vadd.xlane.f32.xlu0 %v150_v24  ;;  %v153_v27 = vsel %vm136_vm0, %v149_v25, 0.0 }
 0x10b   :  { %154 = vadd.xlane.f32.xlu1 %v153_v27 }
 0x190   :  { %v286_v40 = vpop.xlane.xlu0 %285 }
 0x191   :  { %v290_v41 = vmul.f32 0.03125, %v286_v40 }
 0x193   :  { %v292_v42 = vadd.f32 1e-05, %v290_v41 }
 0x194   :  { %v152_v43 = vpop.xlane.xlu0 %151  ;;  %v289_v44 = vpop.xlane.xlu1 %288 }
 0x195   :  { %1298 = vrsqrt.f32 %v292_v42  ;;  %v156_v45 = vmul.f32 0.03125, %v152_v43  ;;  %v291_v46 = vmul.f32 0.03125, %v289_v44 }
 0x197   :  { %v158_v47 = vadd.f32 1e-05, %v156_v45  ;;  %v293_v48 = vadd.f32 1e-05, %v291_v46  ;;  %v725_v46 = vld [vmem:[#allocation10 + $0x10] sm:$0xff] }
 0x198   :  { %v155_v49 = vpop.xlane.xlu1 %154 }
 0x199   :  { %1300 = vrsqrt.f32 %v158_v47  ;;  %v157_v50 = vmul.f32 0.03125, %v155_v49  ;;  %v726_v47 = vld [vmem:[#allocation10 + $0x18] sm:$0xff] }
 0x19a   :  { %1302 = vrsqrt.f32 %v293_v48  ;;  %v1265_v48 = vpack.c.bf16 %v726_v47, %v725_v46 }
 0x19b   :  { %v159_v51 = vadd.f32 1e-05, %v157_v50 }
 0x19d   :  { %1304 = vrsqrt.f32 %v159_v51 }
 0x19f   :  { %v1299_v52 = vpop.eup %1298 }
 0x1a0   :  { %v296_v54 = vmul.f32 %v1299_v52, %v280_v12 }
 0x1a2   :  { %v298_v56 = vmul.f32 %v1704_v53, %v296_v54  ;;  %v1123_v54 = vld [vmem:[%s1829_s9] ss:$0 sm:$0xff] }
 0x1a3   :  { %v1301_v57 = vpop.eup %1300 }
 0x1a4   :  { %v1303_v58 = vpop.eup %1302  ;;  %v300_v59 = vadd.f32 %v1709_v55, %v298_v56  ;;  %v162_v60 = vmul.f32 %v1301_v57, %v1693_v13 }
 0x1a5   :  { %v297_v61 = vmul.f32 %v1303_v58, %v281_v20 }
 0x1a6   :  { %1189 = vmatprep.mubr.msk.f32.mxu1 %vm136_vm0, %v300_v59  ;;  %v170_v62 = vmul.f32 %v1704_v53, %v162_v60 }
 0x1a7   :  { %v1305_v63 = vpop.eup %1304  ;;  %v299_v0 = vmul.f32 %v1704_v53, %v297_v61 }
 0x1a8   :  { %v1718_v1 = vadd.f32 %v1709_v55, %v170_v62  ;;  %v163_v2 = vmul.f32 %v1305_v63, %v147_v22 }
 0x1a9   :  { %v301_v3 = vadd.f32 %v1709_v55, %v299_v0 }
 0x1aa   :  { %1178 = vmatprep.mubr.msk.f32.mxu0 %vm136_vm0, %v1718_v1  ;;  %v171_v4 = vmul.f32 %v1704_v53, %v163_v2 }
 0x1ab   :  { %1190 = vmatmul.mubr.msk.f32.vlgmr.msra.gmra.mrb[0].mxu1 %vm136_vm0, %v301_v3 }
 0x1ac   :  { %v1726_v5 = vadd.f32 %v1709_v55, %v171_v4  ;;  %1194 = vmatprep.mubr.msk.f32.mxu1 %vm1499_vm1, %v1498_v6 }
 0x1ae   :  { %1179 = vmatmul.mubr.msk.f32.vlgmr.msra.gmra.mrb[0].mxu0 %vm136_vm0, %v1726_v5 }
 0x1af   :  { %1204 = vmatprep.mubr.msk.f32.mxu0 %vm1499_vm1, %v1498_v6 }
 0x27e   :  { %v1191_v8 = vpop.f32.mrb[0].mxu1 }
 0x27f   :  { %v391_v9 = vadd.f32 %v1191_v8, %v1114_v7  ;;  %v385_v10 = vpop.f32.mrb[1].mxu1 }
 0x280   :  { %v386_v12 = vadd.f32 %v1114_v7, %v385_v10 }
 0x281   :  { %1203 = vmatpush3.xpose.msk.msra.mxu0 %vm136_vm0, %v391_v9  ;;  %v1180_v13 = vpop.f32.mrb[0].mxu0 }
 0x282   :  { %v269_v14 = vadd.f32 %v1180_v13, %v1111_v11  ;;  %1193 = vmatpush3.xpose.msk.msra.mxu1 %vm136_vm0, %v386_v12  ;;  %v263_v15 = vpop.f32.mrb[1].mxu0  ;;  %1262 = vmatprep.subr.bf16.mxu0 %v1261_v37  ;;  %v849_v13 = vld [vmem:[%s1830_s10 + $0x10] sm:$0xff] }
 0x283   :  { %v264_v16 = vadd.f32 %v1111_v11, %v263_v15  ;;  %1197 = vmatprep.subr.mxu1 %v1498_v6  ;;  %v848_v11 = vld [vmem:[%s1830_s10 + $0x8] sm:$0xff] }
 0x284   :  { %1205 = vmatmul.mubr.msk.f32.vlgmr.msra.gmra.mrb[2].mxu0 %vm136_vm0, %v269_v14  ;;  %v850_v14 = vld [vmem:[%s1830_s10 + $0x18] sm:$0xff] }
 0x285   :  { %1195 = vmatmul.mubr.msk.f32.vlgmr.msra.gmra.mrb[2].mxu1 %vm136_vm0, %v264_v16  ;;  %1264 = vmatpush3.bf16.msra.mxu0 %v1261_v37  ;;  %v1273_v15 = vpack.c.bf16 %v850_v14, %v849_v13 }
 0x286   :  { %1199 = vmatprep.mubr.msk.f32.mxu1 %vm1499_vm1, %v1498_v6  ;;  %1266 = vmatprep.subr.bf16.mxu0 %v1265_v48 }
 0x289   :  { %1268 = vmatpush3.bf16.msra.mxu0 %v1265_v48 }
 0x357   :  { %v631_v17 = vpop.f32.mrb[2].mxu0 }
 0x358   :  { %v635_v18 = vmul.f32 0.17677669, %v631_v17  ;;  %v466_v19 = vpop.f32.mrb[2].mxu1  ;;  %v1206_v20 = vpop.f32.mrb[3].mxu0 }
 0x359   :  { %v470_v21 = vmul.f32 0.17677669, %v466_v19  ;;  %v1196_v22 = vpop.f32.mrb[3].mxu1 }
 0x35a   :  { %v636_v23 = vsel %vm471_vm2, %v635_v18, -inf }
 0x35b   :  { %637 = vmax.xlane.f32.xlu1 %v636_v23  ;;  %v472_v24 = vsel %vm471_vm2, %v470_v21, -inf }
 0x35c   :  { %473 = vmax.xlane.f32.xlu0 %v472_v24 }
 0x3e8   :  { %v638_v25 = vpop.xlane.xlu1 %637 }
 0x3e9   :  { %v639_v26 = vsub.f32 %v635_v18, %v638_v25  ;;  %v474_v27 = vpop.xlane.xlu0 %473 }
 0x3ea   :  { %v475_v28 = vsub.f32 %v470_v21, %v474_v27 }
 0x3eb   :  { %v640_v29 = vmul.f32 1.442695, %v639_v26 }
 0x3ec   :  { %v476_v30 = vmul.f32 1.442695, %v475_v28 }
 0x3ed   :  { %1306 = vpow2.f32 %v640_v29 }
 0x3ee   :  { %1308 = vpow2.f32 %v476_v30  ;;  %v993_v30 = vld [vmem:[#allocation11] sm:$0xff] }
 0x3f7   :  { %v1307_v31 = vpop.eup %1306 }
 0x3f8   :  { %v1309_v32 = vpop.eup %1308  ;;  %v642_v33 = vsel %vm471_vm2, %v1307_v31, 0.0 }
 0x3f9   :  { %643 = vadd.xlane.f32.xlu1 %v642_v33  ;;  %v478_v34 = vsel %vm471_vm2, %v1309_v32, 0.0  ;;  %v995_v33 = vld [vmem:[#allocation11 + $0x10] sm:$0xff] }
 0x3fa   :  { %479 = vadd.xlane.f32.xlu0 %v478_v34  ;;  %v996_v34 = vld [vmem:[#allocation11 + $0x18] sm:$0xff] }
 0x40a   :  { %647 = vrot.lane.b32.xlu1 %v391_v9, %s1500_s5 }
 0x410   :  { %483 = vrot.lane.b32.xlu0 %v386_v12, %s1500_s5 }
 0x486   :  { %v644_v38 = vpop.xlane.xlu1 %643 }
 0x487   :  { %v480_v39 = vpop.xlane.xlu0 %479 }
 0x488   :  { %1310 = vrcp.f32 %v480_v39 }
 0x489   :  { %1312 = vrcp.f32 %v644_v38 }
 0x48a   :  { %v648_v44 = vpop.permute.xlu1 %647 }
 0x48b   :  { %v484_v40 = vpop.permute.xlu0 %483 }
 0x48c   :  { %1198 = vmatpush3.msra.mxu1 %v484_v40 }
 0x48d   :  { %1207 = vmatprep.subr.mxu1 %v1498_v6 }
 0x492   :  { %v1311_v41 = vpop.eup %1310 }
 0x493   :  { %v482_v42 = vmul.f32 %v1311_v41, %v1309_v32  ;;  %v1313_v43 = vpop.eup %1312 }
 0x494   :  { %v646_v45 = vmul.f32 %v1313_v43, %v1307_v31  ;;  %v994_v31 = vld [vmem:[#allocation11 + $0x8] sm:$0xff] }
 0x495   :  { %1200 = vmatmul.mubr.msk.f32.vlgmr.msra.gmra.mrb[4].mxu1 %vm471_vm2, %v482_v42  ;;  %v1277_v32 = vpack.c.bf16 %v994_v31, %v993_v30  ;;  %v1129_v30 = vld [vmem:[%s1833_s13] ss:$0 sm:$0xff] }
 0x496   :  { %1208 = vmatpush3.msra.mxu1 %v648_v44  ;;  %1209 = vmatprep.mubr.msk.f32.mxu1 %vm1499_vm1, %v1498_v6 }
 0x497   :  { %1278 = vmatprep.subr.bf16.mxu0 %v1277_v32 }
 0x499   :  { %1210 = vmatmul.mubr.msk.f32.vlgmr.msra.gmra.mrb[6].mxu1 %vm471_vm2, %v646_v45 }
 0x568   :  { %v555_v49 = vpop.f32.mrb[4].mxu1 }
 0x569   :  { %v1201_v50 = vpop.f32.mrb[5].mxu1  ;;  %1220 = vmatprep.mubr.msk.f32.mxu0 %vm136_vm0, %v555_v49 }
 0x56c   :  { %v719_v51 = vpop.f32.mrb[6].mxu1 }
 0x56d   :  { %v1211_v52 = vpop.f32.mrb[7].mxu1  ;;  %1221 = vmatmul.mubr.msk.f32.vlgmr.msra.gmra.mrb[4].mxu0 %vm136_vm0, %v719_v51 }
 0x56e   :  { %1280 = vmatpush3.bf16.msra.mxu0 %v1277_v32 }
 0x640   :  { %v1222_v56 = vpop.f32.mrb[4].mxu0 }
 0x641   :  { %v812_v57 = vadd.f32 %v1222_v56, %v1123_v54  ;;  %v806_v58 = vpop.f32.mrb[5].mxu0 }
 0x642   :  { %v807_v59 = vadd.f32 %v1123_v54, %v806_v58 }
 0x643   :  { %v816_v60 = vadd.f32 %v812_v57, %v1726_v5 }
 0x644   :  { %v815_v61 = vadd.f32 %v807_v59, %v1718_v1  ;;  %v847_v1 = vld [vmem:[%s1830_s10] sm:$0xff] }
 0x645   :  { %v820_v62 = vsel %vm136_vm0, %v816_v60, 0.0  ;;  %v1269_v12 = vpack.c.bf16 %v848_v11, %v847_v1 }
 0x646   :  { %821 = vadd.xlane.f32.xlu0 %v820_v62  ;;  %v817_v63 = vsel %vm136_vm0, %v815_v61, 0.0 }
 0x647   :  { %818 = vadd.xlane.f32.xlu1 %v817_v63  ;;  %1270 = vmatprep.subr.bf16.mxu1 %v1269_v12 }
 0x648   :  { %1272 = vmatpush3.bf16.msra.mxu1 %v1269_v12 }
 0x649   :  { %1274 = vmatprep.subr.bf16.mxu1 %v1273_v15 }
 0x64c   :  { %1276 = vmatpush3.bf16.msra.mxu1 %v1273_v15 }
 0x6d3   :  { %v822_v0 = vpop.xlane.xlu0 %821 }
 0x6d4   :  { %v824_v2 = vmul.f32 0.03125, %v822_v0  ;;  %v819_v3 = vpop.xlane.xlu1 %818 }
 0x6d5   :  { %v823_v4 = vmul.f32 0.03125, %v819_v3 }
 0x6d6   :  { %v826_v6 = vsub.f32 %v816_v60, %v824_v2 }
 0x6d7   :  { %v825_v7 = vsub.f32 %v815_v61, %v823_v4 }
 0x6d8   :  { %v828_v8 = vmul.f32 %v826_v6, %v826_v6 }
 0x6d9   :  { %v827_v9 = vmul.f32 %v825_v7, %v825_v7 }
 0x6da   :  { %v832_v10 = vsel %vm136_vm0, %v828_v8, 0.0 }
 0x6db   :  { %833 = vadd.xlane.f32.xlu1 %v832_v10  ;;  %v829_v5 = vsel %vm136_vm0, %v827_v9, 0.0 }
 0x6dc   :  { %830 = vadd.xlane.f32.xlu0 %v829_v5 }
 0x768   :  { %v834_v16 = vpop.xlane.xlu1 %833 }
 0x769   :  { %v836_v17 = vmul.f32 0.03125, %v834_v16  ;;  %v831_v18 = vpop.xlane.xlu0 %830  ;;  %v1501_v16 = vmov -1.0  }
 0x76a   :  { %v835_v19 = vmul.f32 0.03125, %v831_v18 }
 0x76b   :  { %v838_v20 = vadd.f32 1e-05, %v836_v17 }
 0x76c   :  { %v837_v21 = vadd.f32 1e-05, %v835_v19 }
 0x76d   :  { %1314 = vrsqrt.f32 %v838_v20 }
 0x76e   :  { %1316 = vrsqrt.f32 %v837_v21 }
 0x777   :  { %v1315_v22 = vpop.eup %1314 }
 0x778   :  { %v1317_v23 = vpop.eup %1316  ;;  %v842_v24 = vmul.f32 %v1315_v22, %v826_v6 }
 0x779   :  { %v841_v25 = vmul.f32 %v1317_v23, %v825_v7 }
 0x77a   :  { %v844_v26 = vmul.f32 %v1704_v53, %v842_v24 }
 0x77b   :  { %v843_v27 = vmul.f32 %v1704_v53, %v841_v25  ;;  %v1281_v53 = vpack.c.bf16 %v996_v34, %v995_v33 }
 0x77c   :  { %v1787_v29 = vadd.f32 %v1709_v55, %v844_v26 }
 0x77d   :  { %v1784_v28 = vadd.f32 %v1709_v55, %v843_v27  ;;  %1282 = vmatprep.subr.bf16.mxu0 %v1281_v53  ;;  %v1126_v55 = vld [vmem:[%s1831_s11] ss:$0 sm:$0xff] }
 0x77e   :  { %1284 = vmatpush3.bf16.msra.mxu0 %v1281_v53 }
 0x77f   :  { %1231 = vmatprep.mubr.msk.f32.mxu1 %vm136_vm0, %v1784_v28 }
 0x780   :  { %1232 = vmatmul.mubr.msk.f32.vlgmr.msra.gmra.mrb[8].mxu1 %vm136_vm0, %v1787_v29 }
 0x853   :  { %v1233_v35 = vpop.f32.mrb[8].mxu1 }
 0x854   :  { %v936_v36 = vadd.f32 %v1233_v35, %v1126_v55  ;;  %v930_v37 = vpop.f32.mrb[9].mxu1 }
 0x855   :  { %v931_v38 = vadd.f32 %v1126_v55, %v930_v37 }
 0x856   :  { %v942_v39 = vmul.f32 0.70710677, %v936_v36  ;;  %v940_v25 = vmul.f32 0.5, %v936_v36 }
 0x857   :  { %v941_v40 = vmul.f32 0.70710677, %v931_v38  ;;  %v939_v23 = vmul.f32 0.5, %v931_v38 }
 0x858   :  { %v948_v41 = vand.u32 2147483647, %v942_v39  ;;  %vm944_vm3 = vcmp.ge.f32.partialorder %v942_v39, 0.0 }
 0x859   :  { %v947_v42 = vand.u32 2147483647, %v941_v40  ;;  %vm943_vm4 = vcmp.ge.f32.partialorder %v941_v40, 0.0  ;;  %v946_v17 = vsel %vm944_vm3, 1.0, %v1501_v16 }
 0x85a   :  { %v950_v43 = vmul.f32 0.3275911, %v948_v41  ;;  %v976_v47 = vsub.f32 0.0, %v948_v41  ;;  %v945_v20 = vsel %vm943_vm4, 1.0, %v1501_v16 }
 0x85b   :  { %v949_v44 = vmul.f32 0.3275911, %v947_v42  ;;  %v975_v48 = vsub.f32 0.0, %v947_v42 }
 0x85c   :  { %v952_v45 = vadd.f32 1.0, %v950_v43  ;;  %v978_v50 = vmul.f32 %v976_v47, %v948_v41 }
 0x85d   :  { %v951_v46 = vadd.f32 1.0, %v949_v44  ;;  %v977_v54 = vmul.f32 %v975_v48, %v947_v42 }
 0x85e   :  { %1318 = vrcp.f32 %v952_v45  ;;  %v981_v58 = vmul.f32 1.442695, %v978_v50 }
 0x85f   :  { %1320 = vrcp.f32 %v951_v46  ;;  %v979_v61 = vmul.f32 1.442695, %v977_v54 }
 0x860   :  { %1322 = vpow2.f32 %v981_v58 }
 0x861   :  { %1324 = vpow2.f32 %v979_v61 }
 0x868   :  { %v1319_v49 = vpop.eup %1318 }
 0x869   :  { %v1321_v51 = vpop.eup %1320  ;;  %v958_v52 = vmul.f32 1.0614054, %v1319_v49 }
 0x86a   :  { %v957_v56 = vmul.f32 1.0614054, %v1321_v51  ;;  %v1323_v1 = vpop.eup %1322 }
 0x86b   :  { %v960_v57 = vadd.f32 -1.4531521, %v958_v52  ;;  %v1325_v12 = vpop.eup %1324 }
 0x86c   :  { %v959_v59 = vadd.f32 -1.4531521, %v957_v56 }
 0x86d   :  { %v962_v60 = vmul.f32 %v1319_v49, %v960_v57 }
 0x86e   :  { %v961_v62 = vmul.f32 %v1321_v51, %v959_v59 }
 0x86f   :  { %v964_v63 = vadd.f32 1.4214138, %v962_v60 }
 0x870   :  { %v963_v0 = vadd.f32 1.4214138, %v961_v62 }
 0x871   :  { %v966_v2 = vmul.f32 %v1319_v49, %v964_v63 }
 0x872   :  { %v965_v3 = vmul.f32 %v1321_v51, %v963_v0 }
 0x873   :  { %v968_v4 = vadd.f32 -0.28449672, %v966_v2 }
 0x874   :  { %v967_v6 = vadd.f32 -0.28449672, %v965_v3 }
 0x875   :  { %v970_v7 = vmul.f32 %v1319_v49, %v968_v4 }
 0x876   :  { %v969_v8 = vmul.f32 %v1321_v51, %v967_v6 }
 0x877   :  { %v972_v9 = vadd.f32 0.2548296, %v970_v7 }
 0x878   :  { %v971_v10 = vadd.f32 0.2548296, %v969_v8 }
 0x879   :  { %v974_v5 = vmul.f32 %v1319_v49, %v972_v9 }
 0x87a   :  { %v973_v11 = vmul.f32 %v1321_v51, %v971_v10 }
 0x87b   :  { %v984_v13 = vmul.f32 %v1323_v1, %v974_v5 }
 0x87c   :  { %v983_v14 = vmul.f32 %v1325_v12, %v973_v11 }
 0x87d   :  { %v986_v15 = vsub.f32 1.0, %v984_v13 }
 0x87e   :  { %v985_v18 = vsub.f32 1.0, %v983_v14 }
 0x87f   :  { %v988_v19 = vmul.f32 %v986_v15, %v946_v17 }
 0x880   :  { %v987_v21 = vmul.f32 %v985_v18, %v945_v20 }
 0x881   :  { %v990_v22 = vadd.f32 1.0, %v988_v19 }
 0x882   :  { %v989_v24 = vadd.f32 1.0, %v987_v21 }
 0x883   :  { %v992_v27 = vmul.f32 %v990_v22, %v940_v25 }
 0x884   :  { %v991_v26 = vmul.f32 %v989_v24, %v939_v23 }
 0x886   :  { %1242 = vmatprep.mubr.msk.f32.mxu0 %vm136_vm0, %v991_v26 }
 0x887   :  { %1243 = vmatmul.mubr.msk.f32.vlgmr.msra.gmra.mrb[6].mxu0 %vm136_vm0, %v992_v27 }
 0x95a   :  { %v1244_v31 = vpop.f32.mrb[6].mxu0 }
 0x95b   :  { %v1082_v32 = vadd.f32 %v1244_v31, %v1129_v30  ;;  %v1076_v33 = vpop.f32.mrb[7].mxu0 }
 0x95c   :  { %v1077_v34 = vadd.f32 %v1129_v30, %v1076_v33 }
 0x95d   :  { %v1086_v53 = vadd.f32 %v1082_v32, %v1787_v29 }
 0x95e   :  { %v1085_v55 = vadd.f32 %v1077_v34, %v1784_v28 }
 0x95f   :  { %1088 = vst.msk [vmem:[#allocation13 + $0x8] sm:$0xff] %vm136_vm0, %v1086_v53 }
 0x960   :  { %1087 = vst.msk [vmem:[#allocation13] sm:$0xff] %vm136_vm0, %v1085_v55 }
 0x961   :  { %1469 = shalt.err (!%p1466_p10)
}
 0x962   :  { %s1470_s12 = scalar_lea.hbm %s1834_s14, 256 }
 0x963   :  { %p1471_p11 = scmp.ne.s32.totalorder %s1834_s14, %s1470_s12  ;;  %p1474_p12 = scmp.lt.u32.totalorder %s1470_s12, %s1834_s14 }
 0x965   :  { %p1476_p13 = pnand %p1474_p12, %p1471_p11 }
 0x967   :  { %1479 = shalt.err (!%p1476_p13)
}
 0x968   :  { %1100 = dma.vmem_to_hbm [thread:$0]  %s1095_s22, 256, %s1834_s14, [#allocation4], %s1492_s25, %s1492_s25, %s1493_s26  }
 0x969   :  { %1488 = dma.done.wait [#allocation4], 256  }
 0x96a   :  { %1489 = vsyncadd [#allocation4], 4294967040 }
 0x96b   :  { %1104 = vsyncpa [#allocation3], 1 }
 0x96c   :  { %1105 = vsyncpa [#allocation6], 1 }
 0x96d   :  { %1106 = vsyncpa [#allocation9], 1 }
 0x96e   :  { %1107 = vsyncpa [#allocation12], 1 }
 0x96f   :  { %1108 = vsyncpa [#allocation4], 1 }

</bundles_post_ra>
